<compile_context>
chip_gen: v5e
topology: v5e:2x2
jax: 0.10.0
libtpu: 0.0.40
codegen_flags: <defaults>
</compile_context>

<pallas_src>
import functools

import jax
import jax.numpy as jnp
from jax.experimental import pallas as pl
from jax.experimental.pallas import tpu as pltpu

_SMALL_N_MAX = 1024     # single-invocation path (purely launch-latency bound)
_MAX_TILE_ROWS = 512    # (512, 128) f32 block = 256 KiB/input/buffer; x3 inputs
                        # x2 double-buffering ~ 1.5 MiB: fits v5e/v6e/v7x VMEM


def _weighted_sq_err(pred, psi, std):
    """(psi - pred)^2 * (std*100 + 1), computed in f32 (cast right after load)."""
    pred = pred.astype(jnp.float32)
    psi = psi.astype(jnp.float32)
    std = std.astype(jnp.float32)
    err = psi - pred
    return err * err * (std * jnp.float32(100.0) + jnp.float32(1.0))


def _small_kernel(pred_ref, psi_ref, std_ref, out_ref, *, inv_n):
    # Whole (1, N) arrays live in VMEM; N is static -> no mask, no dynamic
    # denominator. Scalar goes to a (1, 1) SMEM output.
    w = _weighted_sq_err(pred_ref[...], psi_ref[...], std_ref[...])
    out_ref[0, 0] = jnp.sum(w) * inv_n


def _grid_kernel(pred_ref, psi_ref, std_ref, out_ref, acc_ref, *, inv_n):
    # Streaming reduction: steady-state per-tile work is VPU-only adds into a
    # VMEM f32 accumulator; the single cross-lane (XLU) reduce + 1/N scale
    # happens once, in the last grid step.
    k = pl.program_id(0)

    @pl.when(k == 0)
    def _init():
        acc_ref[...] = jnp.zeros_like(acc_ref)

    acc_ref[...] += _weighted_sq_err(pred_ref[...], psi_ref[...], std_ref[...])

    @pl.when(k == pl.num_programs(0) - 1)
    def _finalize():
        out_ref[0, 0] = jnp.sum(acc_ref[...]) * inv_n


def biased_mse_loss(pred_psi_val, psi_val, event_std_psi, *,
                    small_n_max=_SMALL_N_MAX, max_tile_rows=_MAX_TILE_ROWS):
    """Pallas equivalent of BiasedMSELossBasedOnEventStd.forward. Returns scalar f32."""
    assert pred_psi_val.shape == psi_val.shape == event_std_psi.shape
    assert max_tile_rows % 8 == 0
    n = int(pred_psi_val.size)
    if n == 0:
        # torch.mean of an empty tensor is NaN; preserve that semantic.
        return jnp.float32(jnp.nan)
    inv_n = 1.0 / float(n)                      # static; folded at trace time

    pred = pred_psi_val.reshape(-1)
    psi = psi_val.reshape(-1)
    std = event_std_psi.reshape(-1)

    if n <= small_n_max:
        # Launch-latency-bound regime: no pad, no stack, no dynamic-n plumbing.
        out = pl.pallas_call(
            functools.partial(_small_kernel, inv_n=inv_n),
            out_shape=jax.ShapeDtypeStruct((1, 1), jnp.float32),
            in_specs=[pl.BlockSpec(memory_space=pltpu.MemorySpace.VMEM)] * 3,
            out_specs=pl.BlockSpec(memory_space=pltpu.MemorySpace.SMEM),
        )(pred.reshape(1, n), psi.reshape(1, n), std.reshape(1, n))
        return out[0, 0]

    # ---- large-N streaming path: sublane-dense (rows, 128) tiles ----
    rows = -(-n // 128)
    tr = min(max_tile_rows, ((rows + 7) // 8) * 8)   # tile rows, multiple of 8
    rows_pad = -(-rows // tr) * tr
    n_pad = rows_pad * 128
    n_tiles = rows_pad // tr

    def prep(x):
        # Zero padding contributes exactly 0 to the weighted-SSE sum
        # ((0-0)^2 * (0*100+1) == 0), so no in-kernel mask is needed.
        if n_pad != n:
            x = jnp.pad(x, (0, n_pad - n))
        return x.reshape(rows_pad, 128)

    block = pl.BlockSpec((tr, 128), lambda k: (k, 0))
    out = pl.pallas_call(
        functools.partial(_grid_kernel, inv_n=inv_n),
        out_shape=jax.ShapeDtypeStruct((1, 1), jnp.float32),
        grid_spec=pltpu.PrefetchScalarGridSpec(
            num_scalar_prefetch=0,
            grid=(n_tiles,),
            in_specs=[block, block, block],
            out_specs=pl.BlockSpec(memory_space=pltpu.MemorySpace.SMEM),
            scratch_shapes=[pltpu.VMEM((tr, 128), jnp.float32)],
        ),
        compiler_params=pltpu.CompilerParams(
            dimension_semantics=("arbitrary",),
        ),
    )(prep(pred), prep(psi), prep(std))
    # TODO(synk): on v7x, add a leading size-2 "parallel" grid axis so both
    # TensorCores each stream half the samples (two partial sums combined in
    # the wrapper); no effect on single-TC v5e/v6e.
    return out[0, 0]


def _reference(pred, psi, std):
    """Pure-JAX reference mirroring the PyTorch module."""
    pred = pred.astype(jnp.float32).reshape(-1, 1)
    psi = psi.astype(jnp.float32).reshape(-1, 1)
    w = std.astype(jnp.float32).reshape(-1, 1) * 100.0 + 1.0
    return jnp.mean((psi - pred) ** 2 * w)


if __name__ == "__main__":
    # 1) Small batch (typical module usage): single-call path.
    k1, k2, k3 = jax.random.split(jax.random.PRNGKey(0), 3)
    N = 8
    pred_psi_val = jax.random.uniform(k1, (N,), dtype=jnp.float32)
    psi_val = jax.random.uniform(k2, (N,), dtype=jnp.float32)
    event_std_psi = jax.random.uniform(k3, (N,), dtype=jnp.float32) * 0.2

    loss = jax.block_until_ready(
        biased_mse_loss(pred_psi_val, psi_val, event_std_psi))
    ref = _reference(pred_psi_val, psi_val, event_std_psi)
    assert jnp.allclose(loss, ref, rtol=1e-5, atol=1e-6), (loss, ref)

    # 2) Exercise the tiled streaming path (forced with tiny tiles so the
    #    multi-step accumulate / init / finalize code runs on small data).
    k4, k5, k6 = jax.random.split(jax.random.PRNGKey(0), 3)
    N2 = 2000
    p2 = jax.random.uniform(k4, (N2,), dtype=jnp.float32)
    y2 = jax.random.uniform(k5, (N2,), dtype=jnp.float32)
    s2 = jax.random.uniform(k6, (N2,), dtype=jnp.float32) * 0.2
    loss2 = jax.block_until_ready(
        biased_mse_loss(p2, y2, s2, small_n_max=0, max_tile_rows=8))
    ref2 = _reference(p2, y2, s2)
    assert jnp.allclose(loss2, ref2, rtol=1e-4, atol=1e-6), (loss2, ref2)

    print("KERNEL_OK")
</pallas_src>

<mosaic_0001>
module attributes {stable_mosaic.version = 11 : i64} {
  func.func @_small_kernel(%arg0: memref<1x8xf32, #tpu.memory_space<vmem>>, %arg1: memref<1x8xf32, #tpu.memory_space<vmem>>, %arg2: memref<1x8xf32, #tpu.memory_space<vmem>>, %arg3: memref<1x1xf32, #tpu.memory_space<smem>>) attributes {dimension_semantics = [], scalar_prefetch = 0 : i64, scratch_operands = 0 : i64, tpu.core_type = #tpu.core_type<tc>} {
    %c0 = arith.constant 0 : index
    %c0_0 = arith.constant 0 : index
    %0 = vector.load %arg0[%c0, %c0_0] : memref<1x8xf32, #tpu.memory_space<vmem>>, vector<1x8xf32>
    %c0_1 = arith.constant 0 : index
    %c0_2 = arith.constant 0 : index
    %1 = vector.load %arg1[%c0_1, %c0_2] : memref<1x8xf32, #tpu.memory_space<vmem>>, vector<1x8xf32>
    %c0_3 = arith.constant 0 : index
    %c0_4 = arith.constant 0 : index
    %2 = vector.load %arg2[%c0_3, %c0_4] : memref<1x8xf32, #tpu.memory_space<vmem>>, vector<1x8xf32>
    %3 = arith.subf %1, %0 : vector<1x8xf32>
    %4 = arith.mulf %3, %3 : vector<1x8xf32>
    %cst = arith.constant 1.000000e+02 : f32
    %5 = vector.broadcast %cst : f32 to vector<1x8xf32>
    %6 = arith.mulf %2, %5 : vector<1x8xf32>
    %cst_5 = arith.constant 1.000000e+00 : f32
    %7 = vector.broadcast %cst_5 : f32 to vector<1x8xf32>
    %8 = arith.addf %6, %7 : vector<1x8xf32>
    %9 = arith.mulf %4, %8 : vector<1x8xf32>
    %10 = vector.shape_cast %9 : vector<1x8xf32> to vector<1x1x8xf32>
    %cst_6 = arith.constant dense<0.000000e+00> : vector<1xf32>
    %11 = vector.multi_reduction <add>, %10, %cst_6 [1, 2] : vector<1x1x8xf32> to vector<1xf32>
    %12 = vector.shape_cast %11 : vector<1xf32> to vector<1x1x1xf32>
    %13 = vector.extract %12[0, 0, 0] : f32 from vector<1x1x1xf32>
    %cst_7 = arith.constant 1.250000e-01 : f32
    %14 = arith.mulf %13, %cst_7 : f32
    %c0_8 = arith.constant 0 : index
    %c0_9 = arith.constant 0 : index
    %15 = memref.load %arg3[%c0_8, %c0_9] : memref<1x1xf32, #tpu.memory_space<smem>>
    memref.store %14, %arg3[%c0_8, %c0_9] : memref<1x1xf32, #tpu.memory_space<smem>>
    return
  }
}

</mosaic_0001>

<bundles_post_ra>
// kernel: tpu_custom_call.1
= control target key start
LH: loop header
LB: loop body
LE: loop exit
PB: predicated region body
PF: predicated region fallthrough
CT: control target
= control target key end

     0   :  { %8 = vsyncpa [#allocation3], 0  ;;  %s188_s0 = inlined_call_operand.hbm [shape: f32[1,8], index: 0, kind: input, shape index: {}]   ;;  %s189_s1 = inlined_call_operand.hbm [shape: f32[1,8], index: 1, kind: input, shape index: {}]   ;;  %s190_s2 = inlined_call_operand.vmem [shape: f32[1,8], index: 2, kind: input, shape index: {}]   ;;  %s191_s3 = inlined_call_operand.hbm [shape: f32[1,1], index: 3, kind: output, shape index: {}]  }
   0x1   :  { %9 = vsyncpa [#allocation6], 0 }
   0x2   :  { %10 = vsyncpa [#allocation4], 0  ;;  %s16_s14 = sshll.u32 %s188_s0, 4  ;;  %s153_s15 = smov [#allocation2]   ;;  %s17_s14 = int_to_ptr.hbm [resolvable:$true] %s16_s14 }
   0x3   :  { %s18_s16 = sshll.u32 %s153_s15, 4  ;;  %s27_s19 = sshll.u32 %s189_s1, 4  ;;  %s19_s16 = int_to_ptr.vmem [resolvable:$true] %s18_s16  ;;  %s28_s19 = int_to_ptr.hbm [resolvable:$true] %s27_s19 }
   0x4   :  { %21 = dma.hbm_to_vmem [thread:$0]  %s17_s14, 16, %s19_s16, [#allocation3]  }
   0x5   :  { %s154_s20 = smov [#allocation5]  }
   0x6   :  { %s29_s21 = sshll.u32 %s154_s20, 4  ;;  %s30_s21 = int_to_ptr.vmem [resolvable:$true] %s29_s21 }
   0x7   :  { %32 = dma.hbm_to_vmem [thread:$0]  %s28_s19, 16, %s30_s21, [#allocation6]  }
   0x8   :  { %147 = dma.done.wait [#allocation3], 16  }
   0x9   :  { %148 = vsyncadd [#allocation3], 4294967280 }
   0xa   :  { %149 = dma.done.wait [#allocation6], 16  }
   0xb   :  { %150 = vsyncadd [#allocation6], 4294967280  ;;  %v43_v0 = vld [vmem:[#allocation2] sm:$0x1]  ;;  %v44_v1 = vld [vmem:[#allocation5] sm:$0x1] }
   0xc   :  { %v45_v2 = vld [vmem:[%s190_s2] sm:$0x1]  ;;  %v46_v3 = vsub.f32 %v44_v1, %v43_v0  ;;  %vm51_vm0 = vcmask 57344   ;;  %s70_s2 = sshll.u32 %s191_s3, 4  ;;  %s155_s26 = smov [#allocation7]   ;;  %s71_s2 = int_to_ptr.hbm [resolvable:$true] %s70_s2 }
   0xd   :  { %v48_v4 = vmul.f32 100.0, %v45_v2 }
   0xe   :  { %v47_v5 = vmul.f32 %v46_v3, %v46_v3 }
   0xf   :  { %v49_v6 = vadd.f32 1.0, %v48_v4 }
  0x11   :  { %v50_v7 = vmul.f32 %v49_v6, %v47_v5 }
  0x13   :  { %v52_v8 = vsel %vm51_vm0, %v50_v7, 0.0 }
  0x14   :  { %53 = vadd.xlane.f32.xlu0 %v52_v8 }
  0x87   :  { %v54_v9 = vpop.xlane.xlu0 %53 }
  0x88   :  { %v55_v10 = vrot.slane %v54_v9, 4 }
  0x8a   :  { %v56_v11 = vadd.f32 %v55_v10, %v54_v9 }
  0x8c   :  { %v57_v12 = vrot.slane %v56_v11, 2 }
  0x8e   :  { %v58_v13 = vadd.f32 %v57_v12, %v56_v11 }
  0x90   :  { %v59_v14 = vrot.slane %v58_v13, 1 }
  0x92   :  { %v60_v15 = vadd.f32 %v59_v14, %v58_v13 }
  0x94   :  { %82 = vpush %v60_v15 }
  0xc5   :  { %s83_s24 = spop %82 }
  0xc6   :  { %s62_s25 = smul.f32 0.125, %s83_s24 }
  0xc8   :  { %64 = sst [smem:[#allocation7]] %s62_s25 }
  0xc9   :  { %73 = dma.smem_to_hbm %s155_s26, 16, %s71_s2, [#allocation4]  }
  0xca   :  { %151 = dma.done.wait [#allocation4], 16  }
  0xcb   :  { %152 = vsyncadd [#allocation4], 4294967280 }
  0xcc   :  { %78 = sfence }
  0xcd   :  { %79 = vsyncpa [#allocation3], 1 }
  0xce   :  { %80 = vsyncpa [#allocation6], 1 }
  0xcf   :  { %81 = vsyncpa [#allocation4], 1 }

</bundles_post_ra>
